<compile_context>
chip_gen: v5e
topology: v5e:2x2
jax: 0.10.0
libtpu: 0.0.40
codegen_flags: <defaults>
</compile_context>

<pallas_src>
import functools

import jax
import jax.numpy as jnp
from jax.experimental import pallas as pl
from jax.experimental.pallas import tpu as pltpu


def _seg_merge_kernel(x_ref, g_ref, b_ref, w_ref, wb_ref, o_ref):
    """Fused LayerNorm + Linear on one row tile.

    x_ref : (TN, D_in) f32   merged-segment rows
    g_ref : (1, D_in)  f32   LayerNorm gamma
    b_ref : (1, D_in)  f32   LayerNorm beta
    w_ref : (D_in, D)  bf16  Linear weight, stored (in_features, out_features)
    wb_ref: (1, D)     f32   Linear bias
    o_ref : (TN, D)    f32
    """
    x = x_ref[...].astype(jnp.float32)
    d_in = x.shape[-1]
    inv_d = 1.0 / d_in

    # Single-pass LN statistics; biased variance + eps=1e-5 matches
    # torch.nn.LayerNorm defaults.
    s1 = jnp.sum(x, axis=-1, keepdims=True)
    s2 = jnp.sum(x * x, axis=-1, keepdims=True)
    mean = s1 * inv_d
    var = s2 * inv_d - mean * mean
    inv = jax.lax.rsqrt(var + 1e-5)
    xn = (x - mean) * inv * g_ref[...] + b_ref[...]

    # bf16 x bf16 -> f32 accumulation on the MXU; bias add in f32.
    y = jnp.dot(xn.astype(jnp.bfloat16), w_ref[...],
                preferred_element_type=jnp.float32) + wb_ref[...]
    o_ref[...] = y.astype(o_ref.dtype)


def _pick_row_tile(n_rows, d_in, d_out, row_tile):
    """Largest row tile that keeps double-buffered blocks well inside VMEM."""
    bytes_per_row = 2 * 4 * (d_in + d_out)   # f32 in + out blocks, x2 buffers
    budget = 12 * 1024 * 1024                # headroom inside 32 MiB scoped VMEM
    cap = max(budget // bytes_per_row, 8)
    tn = min(row_tile, cap)
    tn = max((tn // 8) * 8, 8)               # sublane-aligned when tiling
    if tn >= n_rows:
        return n_rows                        # block == full dim is always legal
    return tn


@functools.partial(jax.jit, static_argnames=("win_size", "row_tile"))
def seg_merging_forward(x, gamma, beta, w_t, bias, *, win_size, row_tile=1024):
    """x: (B, ts_d, seg_num, d_model) f32 -> (B, ts_d, ceil(seg_num/win), d_model)."""
    B, T, L, D = x.shape
    pad = (-L) % win_size
    if pad:
        # Same semantics as torch.cat((x, x[:, :, -pad:, :]), dim=-2).
        # TODO(synk): fold this replication pad into the kernel (scalar-prefetched
        # segment table / per-(b,t) tail row) to avoid materializing a padded
        # copy of x; a lane-blocked in-kernel variant needs win*d_model % 128 == 0,
        # so the general case keeps this copy (triggered only for ragged seg_num).
        x = jnp.concatenate([x, x[:, :, -pad:, :]], axis=2)
    Lm = x.shape[2] // win_size
    D_in = win_size * D
    N = B * T * Lm

    # torch.cat([x[:, :, i::win, :] for i in range(win)], -1) on the padded
    # tensor == this contiguous (free) reshape.
    x2 = x.reshape(N, D_in)

    tn = _pick_row_tile(N, D_in, D, row_tile)
    grid = (pl.cdiv(N, tn),)

    out = pl.pallas_call(
        _seg_merge_kernel,
        out_shape=jax.ShapeDtypeStruct((N, D), jnp.float32),
        grid=grid,
        in_specs=[
            pl.BlockSpec((tn, D_in), lambda i: (i, 0)),   # row-tiled activations
            pl.BlockSpec((1, D_in), lambda i: (0, 0)),    # gamma  (VMEM resident)
            pl.BlockSpec((1, D_in), lambda i: (0, 0)),    # beta   (VMEM resident)
            pl.BlockSpec((D_in, D), lambda i: (0, 0)),    # weight (VMEM resident, bf16)
            pl.BlockSpec((1, D), lambda i: (0, 0)),       # bias   (VMEM resident)
        ],
        out_specs=pl.BlockSpec((tn, D), lambda i: (i, 0)),
        compiler_params=pltpu.CompilerParams(
            dimension_semantics=("parallel",),   # row tiles megacore-shardable (v7x)
            vmem_limit_bytes=32 * 1024 * 1024,
        ),
    )(x2,
      gamma.reshape(1, D_in),
      beta.reshape(1, D_in),
      w_t.astype(jnp.bfloat16),
      bias.reshape(1, D))

    return out.reshape(B, T, Lm, D)


def _reference(x, gamma, beta, w_t, bias, win_size):
    """Pure-JAX f32 reference matching the PyTorch forward."""
    B, T, L, D = x.shape
    pad = (-L) % win_size
    if pad:
        x = jnp.concatenate([x, x[:, :, -pad:, :]], axis=2)
    segs = [x[:, :, i::win_size, :] for i in range(win_size)]
    xm = jnp.concatenate(segs, axis=-1)
    mean = jnp.mean(xm, axis=-1, keepdims=True)
    var = jnp.mean((xm - mean) ** 2, axis=-1, keepdims=True)
    xn = (xm - mean) / jnp.sqrt(var + 1e-5) * gamma + beta
    return xn @ w_t + bias


def _run_case(key, B, ts_d, seg_num, d_model, win_size, row_tile):
    kx, kw, kb, kg, kbt = jax.random.split(key, 5)
    D_in = win_size * d_model
    x = jax.random.normal(kx, (B, ts_d, seg_num, d_model), dtype=jnp.float32)
    # nn.Linear(win_size*d_model, d_model): weight (d_model, D_in) is passed
    # transposed (D_in, d_model) for the kernel matmul; bias (d_model,).
    w_t = jax.random.normal(kw, (D_in, d_model), dtype=jnp.float32) * 0.05
    bias = jax.random.normal(kb, (d_model,), dtype=jnp.float32) * 0.05
    # nn.LayerNorm(win_size*d_model): gamma, beta.
    gamma = 1.0 + 0.1 * jax.random.normal(kg, (D_in,), dtype=jnp.float32)
    beta = 0.1 * jax.random.normal(kbt, (D_in,), dtype=jnp.float32)

    out = seg_merging_forward(x, gamma, beta, w_t, bias,
                              win_size=win_size, row_tile=row_tile)
    out = jax.block_until_ready(out)

    ref = _reference(x, gamma, beta, w_t, bias, win_size)
    assert out.shape == ref.shape, (out.shape, ref.shape)
    # bf16 MXU operands with f32 accumulation vs an f32 reference.
    err = float(jnp.max(jnp.abs(out - ref)))
    assert jnp.allclose(out, ref, atol=4e-2, rtol=4e-2), err


if __name__ == "__main__":
    key = jax.random.PRNGKey(0)
    k1, k2, k3 = jax.random.split(key, 3)

    # Odd seg_num exercises the replication-pad path; single row tile (N=32).
    _run_case(k1, B=2, ts_d=4, seg_num=7, d_model=32, win_size=2, row_tile=1024)

    # Multi-step grid with a partial last row tile (N=60 rows, tile=16 -> 4
    # grid steps) to exercise the tiled / masked-writeback path.
    _run_case(k2, B=3, ts_d=5, seg_num=7, d_model=32, win_size=2, row_tile=16)

    # win_size=4, no pad, full-array row block (N=12 rows, not a multiple of 8).
    _run_case(k3, B=2, ts_d=3, seg_num=8, d_model=32, win_size=4, row_tile=1024)

    print("KERNEL_OK")
</pallas_src>

<mosaic_0001>
module attributes {stable_mosaic.version = 11 : i64} {
  func.func @_seg_merge_kernel(%arg0: i32, %arg1: memref<32x64xf32, #tpu.memory_space<vmem>>, %arg2: memref<1x64xf32, #tpu.memory_space<vmem>>, %arg3: memref<1x64xf32, #tpu.memory_space<vmem>>, %arg4: memref<64x32xbf16, #tpu.memory_space<vmem>>, %arg5: memref<1x32xf32, #tpu.memory_space<vmem>>, %arg6: memref<32x32xf32, #tpu.memory_space<vmem>>) attributes {dimension_semantics = [#tpu.dimension_semantics<parallel>], iteration_bounds = array<i64: 1>, scalar_prefetch = 0 : i64, scratch_operands = 0 : i64, tpu.core_type = #tpu.core_type<tc>, window_params = [{transform_indices = @transform_0, window_bounds = array<i64: 32, 64>}, {pipeline_mode = #tpu.pipeline_mode<synchronous>, transform_indices = @transform_1, window_bounds = array<i64: 1, 64>}, {pipeline_mode = #tpu.pipeline_mode<synchronous>, transform_indices = @transform_2, window_bounds = array<i64: 1, 64>}, {pipeline_mode = #tpu.pipeline_mode<synchronous>, transform_indices = @transform_3, window_bounds = array<i64: 64, 32>}, {pipeline_mode = #tpu.pipeline_mode<synchronous>, transform_indices = @transform_4, window_bounds = array<i64: 1, 32>}, {transform_indices = @transform_5, window_bounds = array<i64: 32, 32>}]} {
    %c0 = arith.constant 0 : index
    %c0_0 = arith.constant 0 : index
    %0 = vector.load %arg1[%c0, %c0_0] : memref<32x64xf32, #tpu.memory_space<vmem>>, vector<32x64xf32>
    %cst = arith.constant dense<0.000000e+00> : vector<32xf32>
    %1 = vector.multi_reduction <add>, %0, %cst [1] : vector<32x64xf32> to vector<32xf32>
    %2 = vector.shape_cast %1 : vector<32xf32> to vector<32x1xf32>
    %3 = arith.mulf %0, %0 : vector<32x64xf32>
    %cst_1 = arith.constant dense<0.000000e+00> : vector<32xf32>
    %4 = vector.multi_reduction <add>, %3, %cst_1 [1] : vector<32x64xf32> to vector<32xf32>
    %5 = vector.shape_cast %4 : vector<32xf32> to vector<32x1xf32>
    %cst_2 = arith.constant 1.562500e-02 : f32
    %6 = vector.broadcast %cst_2 : f32 to vector<32x1xf32>
    %7 = arith.mulf %2, %6 : vector<32x1xf32>
    %cst_3 = arith.constant 1.562500e-02 : f32
    %8 = vector.broadcast %cst_3 : f32 to vector<32x1xf32>
    %9 = arith.mulf %5, %8 : vector<32x1xf32>
    %10 = arith.mulf %7, %7 : vector<32x1xf32>
    %11 = arith.subf %9, %10 : vector<32x1xf32>
    %cst_4 = arith.constant 9.99999974E-6 : f32
    %12 = vector.broadcast %cst_4 : f32 to vector<32x1xf32>
    %13 = arith.addf %11, %12 : vector<32x1xf32>
    %14 = math.rsqrt %13 : vector<32x1xf32>
    %15 = vector.broadcast %7 : vector<32x1xf32> to vector<32x64xf32>
    %16 = arith.subf %0, %15 : vector<32x64xf32>
    %17 = vector.broadcast %14 : vector<32x1xf32> to vector<32x64xf32>
    %18 = arith.mulf %16, %17 : vector<32x64xf32>
    %c0_5 = arith.constant 0 : index
    %c0_6 = arith.constant 0 : index
    %19 = vector.load %arg2[%c0_5, %c0_6] : memref<1x64xf32, #tpu.memory_space<vmem>>, vector<1x64xf32>
    %20 = vector.broadcast %19 : vector<1x64xf32> to vector<32x64xf32>
    %21 = arith.mulf %18, %20 : vector<32x64xf32>
    %c0_7 = arith.constant 0 : index
    %c0_8 = arith.constant 0 : index
    %22 = vector.load %arg3[%c0_7, %c0_8] : memref<1x64xf32, #tpu.memory_space<vmem>>, vector<1x64xf32>
    %23 = vector.broadcast %22 : vector<1x64xf32> to vector<32x64xf32>
    %24 = arith.addf %21, %23 : vector<32x64xf32>
    %25 = arith.truncf %24 : vector<32x64xf32> to vector<32x64xbf16>
    %c0_9 = arith.constant 0 : index
    %c0_10 = arith.constant 0 : index
    %26 = vector.load %arg4[%c0_9, %c0_10] : memref<64x32xbf16, #tpu.memory_space<vmem>>, vector<64x32xbf16>
    %cst_11 = arith.constant dense<0.000000e+00> : vector<32x32xf32>
    %27 = tpu.matmul %25, %26, %cst_11 {dimension_numbers = #tpu.dot_dimension_numbers<[1], [0], [0], [1], [0, 0, 1, 1], [], []>} : vector<32x64xbf16>, vector<64x32xbf16>, vector<32x32xf32> -> vector<32x32xf32>
    %c0_12 = arith.constant 0 : index
    %c0_13 = arith.constant 0 : index
    %28 = vector.load %arg5[%c0_12, %c0_13] : memref<1x32xf32, #tpu.memory_space<vmem>>, vector<1x32xf32>
    %29 = vector.broadcast %28 : vector<1x32xf32> to vector<32x32xf32>
    %30 = arith.addf %27, %29 : vector<32x32xf32>
    %c0_14 = arith.constant 0 : index
    %c0_15 = arith.constant 0 : index
    %31 = vector.load %arg6[%c0_14, %c0_15] : memref<32x32xf32, #tpu.memory_space<vmem>>, vector<32x32xf32>
    tpu.vector_store %arg6[%c0_14, %c0_15], %30 {strides = array<i32>} : memref<32x32xf32, #tpu.memory_space<vmem>>, vector<32x32xf32>,
    return
  }
  func.func @transform_0(%arg0: i32) -> (i32, i32) {
    %c0_i32 = arith.constant 0 : i32
    %c0_i32_0 = arith.constant 0 : i32
    return %arg0, %c0_i32 : i32, i32
  }
  func.func @transform_1(%arg0: i32) -> (i32, i32) {
    %c0_i32 = arith.constant 0 : i32
    %c0_i32_0 = arith.constant 0 : i32
    %c0_i32_1 = arith.constant 0 : i32
    return %c0_i32, %c0_i32_0 : i32, i32
  }
  func.func @transform_2(%arg0: i32) -> (i32, i32) {
    %c0_i32 = arith.constant 0 : i32
    %c0_i32_0 = arith.constant 0 : i32
    %c0_i32_1 = arith.constant 0 : i32
    return %c0_i32, %c0_i32_0 : i32, i32
  }
  func.func @transform_3(%arg0: i32) -> (i32, i32) {
    %c0_i32 = arith.constant 0 : i32
    %c0_i32_0 = arith.constant 0 : i32
    %c0_i32_1 = arith.constant 0 : i32
    return %c0_i32, %c0_i32_0 : i32, i32
  }
  func.func @transform_4(%arg0: i32) -> (i32, i32) {
    %c0_i32 = arith.constant 0 : i32
    %c0_i32_0 = arith.constant 0 : i32
    %c0_i32_1 = arith.constant 0 : i32
    return %c0_i32, %c0_i32_0 : i32, i32
  }
  func.func @transform_5(%arg0: i32) -> (i32, i32) {
    %c0_i32 = arith.constant 0 : i32
    %c0_i32_0 = arith.constant 0 : i32
    return %arg0, %c0_i32 : i32, i32
  }
}

</mosaic_0001>

<bundles_post_ra>
// kernel: seg_merging_forward.1
= control target key start
LH: loop header
LB: loop body
LE: loop exit
PB: predicated region body
PF: predicated region fallthrough
CT: control target
= control target key end

     0   :  { %vm26_vm0 = vcmask 523264   ;;  %s408_s0 = inlined_call_operand.vmem [shape: f32[32,64], index: 0, kind: input, shape index: {}]   ;;  %s409_s1 = inlined_call_operand.vmem [shape: f32[1,64], index: 1, kind: input, shape index: {}]   ;;  %s410_s2 = inlined_call_operand.vmem [shape: f32[1,64], index: 2, kind: input, shape index: {}]   ;;  %s411_s3 = inlined_call_operand.vmem [shape: bf16[64,32], index: 3, kind: input, shape index: {}]   ;;  %s412_s4 = inlined_call_operand.vmem [shape: f32[1,32], index: 4, kind: input, shape index: {}]   ;;  %s413_s5 = inlined_call_operand.hbm [shape: f32[32,32], index: 5, kind: output, shape index: {}]  }
   0x1   :  { %v327_v0 = vld [vmem:[%s408_s0 + $0x10] sm:$0xff]  ;;  %v332_v1 = vld [vmem:[%s408_s0] sm:$0xff]  ;;  %v343_v5 = vld [vmem:[%s408_s0 + $0x8] sm:$0xff] }
   0x2   :  { %v33_v2 = vsel %vm26_vm0, %v327_v0, 0.0  ;;  %v27_v3 = vsel %vm26_vm0, %v332_v1, 0.0  ;;  %v39_v4 = vmul.f32 %v332_v1, %v332_v1 }
   0x3   :  { %34 = vadd.xlane.f32.xlu1 %v33_v2  ;;  %28 = vadd.xlane.f32.xlu0 %v27_v3 }
   0x4   :  { %v43_v6 = vsel %vm26_vm0, %v39_v4, 0.0 }
   0x5   :  { %10 = vsyncpa [#allocation3], 0  ;;  %44 = vadd.xlane.f32.xlu2 %v43_v6  ;;  %v349_v7 = vld [vmem:[%s408_s0 + $0x18] sm:$0xff]  ;;  %v40_v8 = vmul.f32 %v343_v5, %v343_v5  ;;  %v30_v10 = vsel %vm26_vm0, %v343_v5, 0.0  ;;  %v41_v13 = vmul.f32 %v327_v0, %v327_v0  ;;  %v245_v17 = vld [vmem:[%s411_s3 + $0x10] sm:$0xff]  ;;  %vm202_vm13 = vcmask 261120  }
   0x6   :  { %v36_v9 = vsel %vm26_vm0, %v349_v7, 0.0  ;;  %v42_v12 = vmul.f32 %v349_v7, %v349_v7  ;;  %v246_v16 = vld [vmem:[%s411_s3 + $0x18] sm:$0xff]  ;;  %v244_v23 = vld [vmem:[%s411_s3 + $0x8] sm:$0xff]  ;;  %v243_v26 = vld [vmem:[%s411_s3] sm:$0xff]  ;;  %s291_s11 = smov [#allocation2]   ;;  %s213_s15 = sshll.u32 %s413_s5, 4  ;;  %s214_s15 = int_to_ptr.hbm [resolvable:$true] %s213_s15 }
   0x7   :  { %v46_v11 = vsel %vm26_vm0, %v40_v8, 0.0  ;;  %v49_v15 = vsel %vm26_vm0, %v41_v13, 0.0  ;;  %187 = vmatpush.bf16.msra.mxu0 %v246_v16  ;;  %247 = vmatpush.bf16.msra.mxu1 %v246_v16  ;;  %v254_v6 = vld [vmem:[%s409_s1] ss:$0 sm:$0xff]  ;;  %s211_s12 = sshll.u32 %s291_s11, 4  ;;  %s293_s16 = smov 8   ;;  %s212_s12 = int_to_ptr.vmem [resolvable:$true] %s211_s12 }
   0x8   :  { %v52_v14 = vsel %vm26_vm0, %v42_v12, 0.0  ;;  %v255_v16 = vld [vmem:[%s410_s2] ss:$0 sm:$0xff] }
   0xb   :  { %37 = vadd.xlane.f32.xlu1 %v36_v9  ;;  %31 = vadd.xlane.f32.xlu0 %v30_v10 }
   0xc   :  { %188 = vmatpush.bf16.msra.mxu0 %v245_v17  ;;  %248 = vmatpush.bf16.msra.mxu1 %v245_v17 }
   0xd   :  { %47 = vadd.xlane.f32.xlu2 %v46_v11 }
  0x10   :  { %189 = vmatpush.bf16.msra.mxu0 %v244_v23  ;;  %249 = vmatpush.bf16.msra.mxu1 %v244_v23 }
  0x13   :  { %53 = vadd.xlane.f32.xlu1 %v52_v14  ;;  %50 = vadd.xlane.f32.xlu0 %v49_v15 }
  0x14   :  { %190 = vmatpush.bf16.msra.mxu0 %v243_v26  ;;  %250 = vmatpush.bf16.msra.mxu1 %v243_v26 }
  0x76   :  { %v35_v18 = vpop.xlane.xlu1 %34  ;;  %v29_v19 = vpop.xlane.xlu0 %28 }
  0x77   :  { %v55_v20 = vmul.f32 0.015625, %v29_v19  ;;  %v376_v33 = vmul.f32 0.015625, %v35_v18 }
  0x78   :  { %v45_v21 = vpop.xlane.xlu2 %44 }
  0x79   :  { %v63_v22 = vmul.f32 %v55_v20, %v55_v20  ;;  %v59_v24 = vmul.f32 0.015625, %v45_v21  ;;  %v65_v38 = vmul.f32 %v376_v33, %v376_v33  ;;  %v115_v61 = vsub.f32 %v332_v1, %v55_v20 }
  0x7a   :  { %v117_v21 = vsub.f32 %v327_v0, %v376_v33  ;;  %v256_v0 = vld [vmem:[%s412_s4] ss:$0 sm:$0xff]  ;;  %s292_s4 = smov 128  }
  0x7b   :  { %v67_v25 = vsub.f32 %v59_v24, %v63_v22 }
  0x7d   :  { %v71_v27 = vadd.f32 1e-05, %v67_v25 }
  0x7e   :  { %v38_v28 = vpop.xlane.xlu1 %37  ;;  %v32_v29 = vpop.xlane.xlu0 %31 }
  0x7f   :  { %v56_v30 = vmul.f32 0.015625, %v32_v29  ;;  %257 = vrsqrt.f32 %v71_v27  ;;  %v378_v35 = vmul.f32 0.015625, %v38_v28  ;;  %vm81_vm2 = vweird.f32 %v71_v27 }
  0x80   :  { %v48_v31 = vpop.xlane.xlu2 %47 }
  0x81   :  { %v64_v32 = vmul.f32 %v56_v30, %v56_v30  ;;  %v60_v34 = vmul.f32 0.015625, %v48_v31  ;;  %v66_v43 = vmul.f32 %v378_v35, %v378_v35  ;;  %v116_v10 = vsub.f32 %v343_v5, %v56_v30 }
  0x82   :  { %v118_v5 = vsub.f32 %v349_v7, %v378_v35 }
  0x83   :  { %v68_v36 = vsub.f32 %v60_v34, %v64_v32 }
  0x85   :  { %v258_v37 = vpop.eup %257  ;;  %v72_v39 = vadd.f32 1e-05, %v68_v36 }
  0x86   :  { %v54_v40 = vpop.xlane.xlu1 %53  ;;  %v51_v41 = vpop.xlane.xlu0 %50  ;;  %v76_v42 = vmul.f32 %v258_v37, %v71_v27  ;;  %vm82_vm1 = vweird.f32 %v258_v37 }
  0x87   :  { %v62_v44 = vmul.f32 0.015625, %v54_v40  ;;  %v61_v45 = vmul.f32 0.015625, %v51_v41  ;;  %259 = vrsqrt.f32 %v72_v39  ;;  %vm83_vm3 = vmor %vm81_vm2, %vm82_vm1  ;;  %vm91_vm5 = vweird.f32 %v72_v39 }
  0x88   :  { %v77_v46 = vmul.f32 %v258_v37, %v76_v42 }
  0x89   :  { %v70_v47 = vsub.f32 %v62_v44, %v66_v43  ;;  %v69_v48 = vsub.f32 %v61_v45, %v65_v38 }
  0x8a   :  { %v78_v49 = vmul.f32 0.5, %v77_v46 }
  0x8b   :  { %v74_v50 = vadd.f32 1e-05, %v70_v47  ;;  %v73_v51 = vadd.f32 1e-05, %v69_v48 }
  0x8c   :  { %v79_v52 = vsub.f32 1.5, %v78_v49 }
  0x8d   :  { %261 = vrsqrt.f32 %v74_v50  ;;  %v260_v53 = vpop.eup %259  ;;  %vm111_vm9 = vweird.f32 %v74_v50  ;;  %vm101_vm11 = vweird.f32 %v73_v51 }
  0x8e   :  { %263 = vrsqrt.f32 %v73_v51  ;;  %v80_v54 = vmul.f32 %v258_v37, %v79_v52  ;;  %v86_v55 = vmul.f32 %v260_v53, %v72_v39  ;;  %vm92_vm4 = vweird.f32 %v260_v53 }
  0x8f   :  { %vm93_vm6 = vmor %vm91_vm5, %vm92_vm4 }
  0x90   :  { %v87_v56 = vmul.f32 %v260_v53, %v86_v55  ;;  %v84_v58 = vsel %vm83_vm3, %v258_v37, %v80_v54 }
  0x91   :  { %v119_v4 = vmul.f32 %v115_v61, %v84_v58 }
  0x92   :  { %v88_v59 = vmul.f32 0.5, %v87_v56 }
  0x93   :  { %v262_v57 = vpop.eup %261  ;;  %v127_v15 = vmul.f32 %v254_v6, %v119_v4 }
  0x94   :  { %v264_v60 = vpop.eup %263  ;;  %v106_v62 = vmul.f32 %v262_v57, %v74_v50  ;;  %v89_v63 = vsub.f32 1.5, %v88_v59  ;;  %vm112_vm7 = vweird.f32 %v262_v57 }
  0x95   :  { %v96_v2 = vmul.f32 %v264_v60, %v73_v51  ;;  %vm102_vm8 = vweird.f32 %v264_v60  ;;  %vm113_vm10 = vmor %vm111_vm9, %vm112_vm7  ;;  %v135_v23 = vadd.f32 %v255_v16, %v127_v15 }
  0x96   :  { %v107_v3 = vmul.f32 %v262_v57, %v106_v62  ;;  %v90_v8 = vmul.f32 %v260_v53, %v89_v63  ;;  %vm103_vm12 = vmor %vm101_vm11, %vm102_vm8 }
  0x97   :  { %v97_v9 = vmul.f32 %v264_v60, %v96_v2 }
  0x98   :  { %v108_v11 = vmul.f32 0.5, %v107_v3  ;;  %v94_v12 = vsel %vm93_vm6, %v260_v53, %v90_v8 }
  0x99   :  { %v98_v13 = vmul.f32 0.5, %v97_v9  ;;  %v120_v14 = vmul.f32 %v116_v10, %v94_v12 }
  0x9a   :  { %v109_v1 = vsub.f32 1.5, %v108_v11 }
  0x9b   :  { %v99_v17 = vsub.f32 1.5, %v98_v13  ;;  %v128_v19 = vmul.f32 %v254_v6, %v120_v14 }
  0x9c   :  { %v110_v18 = vmul.f32 %v262_v57, %v109_v1 }
  0x9d   :  { %v100_v20 = vmul.f32 %v264_v60, %v99_v17  ;;  %v136_v24 = vadd.f32 %v255_v16, %v128_v19 }
  0x9e   :  { %v114_v22 = vsel %vm113_vm10, %v262_v57, %v110_v18 }
  0x9f   :  { %v104_v25 = vsel %vm103_vm12, %v264_v60, %v100_v20  ;;  %v122_v26 = vmul.f32 %v118_v5, %v114_v22  ;;  %v139_v27 = vpack.c.bf16 %v136_v24, %v135_v23 }
  0xa0   :  { %v121_v28 = vmul.f32 %v117_v21, %v104_v25 }
  0xa1   :  { %v130_v29 = vmul.f32 %v254_v6, %v122_v26  ;;  %241 = vmatmul.msk.bf16.vlgmr.msra.gmra.mxu0 %vm26_vm0, %v139_v27 }
  0xa2   :  { %v129_v30 = vmul.f32 %v254_v6, %v121_v28 }
  0xa3   :  { %v138_v31 = vadd.f32 %v255_v16, %v130_v29 }
  0xa4   :  { %v137_v7 = vadd.f32 %v255_v16, %v129_v30 }
  0xa6   :  { %v140_v32 = vpack.c.bf16 %v138_v31, %v137_v7 }
  0xa8   :  { %242 = vmatmul.msk.bf16.vlgmr.msra.gmra.mxu1 %vm26_vm0, %v140_v32 }
 0x11e   :  { %v192_v33 = vpop.f32.mrf.mxu0 }
 0x11f   :  { %v193_v34 = vadd.f32 %v256_v0, %v192_v33 }
 0x121   :  { %203 = vst.msk [vmem:[#allocation2] sm:$0xff] %vm202_vm13, %v193_v34 }
 0x125   :  { %v197_v35 = vpop.f32.mrf.mxu1 }
 0x126   :  { %v198_v36 = vadd.f32 %v256_v0, %v197_v35  ;;  %v194_v37 = vpop.f32.mrf.mxu0 }
 0x127   :  { %v195_v38 = vadd.f32 %v256_v0, %v194_v37 }
 0x128   :  { %205 = vst.msk [vmem:[#allocation2 + $0x10] sm:$0xff] %vm202_vm13, %v198_v36 }
 0x129   :  { %204 = vst.msk [vmem:[#allocation2 + $0x8] sm:$0xff] %vm202_vm13, %v195_v38 }
 0x12d   :  { %v199_v39 = vpop.f32.mrf.mxu1 }
 0x12e   :  { %v200_v40 = vadd.f32 %v256_v0, %v199_v39 }
 0x130   :  { %206 = vst.msk [vmem:[#allocation2 + $0x18] sm:$0xff] %vm202_vm13, %v200_v40 }
 0x131   :  { %219 = dma.vmem_to_hbm [thread:$0]  %s212_s12, 512, %s214_s15, [#allocation3], %s292_s4, %s292_s4, %s293_s16  }
 0x132   :  { %289 = dma.done.wait [#allocation3], 512  }
 0x133   :  { %290 = vsyncadd [#allocation3], 4294966784 }
 0x134   :  { %224 = vsyncpa [#allocation3], 1 }

</bundles_post_ra>
